<compile_context>
chip_gen: v7x
topology: tpu7x:2x2x1
jax: 0.10.0
libtpu: 0.0.40
codegen_flags: <defaults>
</compile_context>

<pallas_src>
import functools

import jax
import jax.numpy as jnp
import numpy as np
from jax.experimental import pallas as pl
from jax.experimental.pallas import tpu as pltpu


# ----------------------------- Pallas kernel --------------------------------
def _sim_dis_kernel(fs_ref, ft_ref, out_ref, *, inv_denom):
    """fs_ref/ft_ref: (BT, m, C*) max-pooled features, channels lane-dense.
    out_ref: (8, 128) block holding this batch-tile's (already scaled) partial."""

    def normalized(ref):
        f = ref[...].astype(jnp.float32)                    # (BT, m, C)
        ss = jnp.sum(f * f, axis=-1, keepdims=True)         # (BT, m, 1) lane reduce
        # EUP rsqrt; matches the reference 1/(sqrt(ss)+1e-8) to ~1e-8 rel.
        return f * jax.lax.rsqrt(ss + 1e-16)

    fs = normalized(fs_ref)
    ft = normalized(ft_ref)

    # Batched Gram matrices: contraction over the minor (channel) axis -> MXU.
    gs = jnp.einsum('bmc,bnc->bmn', fs, fs, preferred_element_type=jnp.float32)
    gt = jnp.einsum('bmc,bnc->bmn', ft, ft, preferred_element_type=jnp.float32)

    d = gt - gs
    e = d * d
    tot = jnp.sum(e, axis=-1, keepdims=True)                 # (BT, m, 1)
    tot = jnp.sum(tot, axis=1, keepdims=True)                # (BT, 1, 1)
    tot = jnp.sum(tot, axis=0)                               # (1, 1)

    # Full-block, lane-dense, unmasked store of the scaled partial.
    out_ref[...] = jnp.zeros(out_ref.shape, out_ref.dtype) + tot * inv_denom


# ------------------------------ host wrapper ---------------------------------
def _ceil_div(a, b):
    return -(-a // b)


def _round_up(x, n):
    return _ceil_div(x, n) * n


def _maxpool_ceil_to_mc(f, ph, pw):
    """nn.MaxPool2d(kernel=(ph,pw), stride=(ph,pw), padding=0, ceil_mode=True)
    on an NCHW tensor, returned channel-last as (B, nh*nw, C).  One fused XLA
    pass over the features; output is P-times smaller than the input."""
    B, C, H, W = f.shape
    nh, nw = _ceil_div(H, ph), _ceil_div(W, pw)
    pooled = jax.lax.reduce_window(
        f, -jnp.inf, jax.lax.max,
        window_dimensions=(1, 1, ph, pw),
        window_strides=(1, 1, ph, pw),
        padding=((0, 0), (0, 0), (0, nh * ph - H), (0, nw * pw - W)))
    # (B, C, nh, nw) -> (B, m, C): tiny tensor, negligible HBM traffic; channels
    # land on the lane axis for the kernel.
    return pooled.reshape(B, C, nh * nw).transpose(0, 2, 1)


def _vmem_budget_bytes():
    """~75% of this chip's VMEM (<=48 MiB on v7x's 64 MiB, <=96 MiB on v5e/v6e)."""
    try:
        cap = int(pltpu.get_tpu_info().vmem_capacity_bytes)
    except Exception:
        cap = 64 * 1024 * 1024                               # conservative (v7x)
    return min(int(cap) * 3 // 4, 96 * 1024 * 1024)


def _pick_batch_tile(B, per_sample_block_bytes, budget_bytes):
    """Largest BT whose double-buffered block fits the VMEM budget; keeps
    nt >= 2 when B >= 2 (feed both v7x TensorCores); pads B instead of
    collapsing to BT=1 for non-divisible batch sizes."""
    max_bt = max(1, budget_bytes // max(2 * per_sample_block_bytes, 1))
    bt = min(B, max_bt)
    if B >= 2:
        bt = min(bt, _ceil_div(B, 2))                        # at least two grid steps
    nt = _ceil_div(B, bt)
    return bt, nt, nt * bt                                   # (tile, #tiles, padded B)


def distillation_loss(feat_s, feat_t, scale=0.5):
    """sim_dis_compute(maxpool(feat_S), maxpool(feat_T)); pooling is one fused
    reduce_window pass, normalize/Gram/loss runs in a single Pallas kernel."""
    B, Cs, H, W = feat_s.shape
    Bt_, Ct, Ht, Wt = feat_t.shape
    assert (B, H, W) == (Bt_, Ht, Wt)
    ph, pw = int(H * scale), int(W * scale)
    nh, nw = _ceil_div(H, ph), _ceil_div(W, pw)              # ceil_mode=True
    m = nh * nw
    inv_denom = 1.0 / (float(m) ** 2 * float(B))             # original B (pre-padding)

    ps = _maxpool_ceil_to_mc(feat_s, ph, pw)                 # (B, m, Cs)
    pt = _maxpool_ceil_to_mc(feat_t, ph, pw)                 # (B, m, Ct)

    # VMEM-padded per-sample block size (both inputs, f32).
    per_sample = 4 * _round_up(m, 8) * (_round_up(Cs, 128) + _round_up(Ct, 128))
    budget = _vmem_budget_bytes()
    BT, nt, B_pad = _pick_batch_tile(B, per_sample, budget)
    if B_pad != B:                                           # zero samples add 0 loss
        ps = jnp.pad(ps, ((0, B_pad - B), (0, 0), (0, 0)))
        pt = jnp.pad(pt, ((0, B_pad - B), (0, 0), (0, 0)))

    kernel = functools.partial(_sim_dis_kernel, inv_denom=inv_denom)
    partials = pl.pallas_call(
        kernel,
        out_shape=jax.ShapeDtypeStruct((nt * 8, 128), jnp.float32),
        grid_spec=pltpu.PrefetchScalarGridSpec(
            num_scalar_prefetch=0,
            grid=(nt,),
            in_specs=[pl.BlockSpec((BT, m, Cs), lambda i: (i, 0, 0)),
                      pl.BlockSpec((BT, m, Ct), lambda i: (i, 0, 0))],
            out_specs=pl.BlockSpec((8, 128), lambda i: (i, 0))),
        compiler_params=pltpu.CompilerParams(
            dimension_semantics=("parallel",),
            vmem_limit_bytes=budget),
    )(ps, pt)

    per_tile = partials.reshape(nt, 8, 128)[:, 0, 0]         # one scaled partial / tile
    return jnp.sum(per_tile)


# ------------------- synthetic teacher / student networks -------------------
class TinyFeatureNet:
    """Synthetic stand-in for t_net / s_net (external in the PyTorch code):
    6 stages of 1x1 conv (bias=False) + ReLU, plus a global-avg-pool head."""

    def __init__(self, key, in_ch, stage_channels, num_classes=10):
        keys = jax.random.split(key, len(stage_channels) + 1)
        self.weights = []
        c_prev = in_ch
        for k, c in zip(keys[:-1], stage_channels):
            w = jax.random.normal(k, (c, c_prev), jnp.float32) * np.sqrt(2.0 / c_prev)
            self.weights.append(w)
            c_prev = c
        self.w_cls = jax.random.normal(keys[-1], (num_classes, c_prev),
                                       jnp.float32) * 0.05
        self.stage_channels = list(stage_channels)

    def get_channel_num(self):
        return self.stage_channels

    def extract_feature(self, x):                            # x: (B, C, H, W)
        feats = []
        h = x
        for w in self.weights:
            h = jnp.einsum('oc,bchw->bohw', w, h)            # 1x1 conv, bias=False
            h = jax.nn.relu(h)
            feats.append(h)
        pooled = jnp.mean(h, axis=(2, 3))                    # global average pool
        out = pooled @ self.w_cls.T
        return feats, out, None


class Distiller:
    # NOTE: the PyTorch __init__ also builds Connectors (1x1 conv + BN) and
    # margin buffers, but forward() never uses them, so they are omitted here.
    # TODO(synk): Connectors / margin buffers (unused by forward) not ported.
    def __init__(self, t_net, s_net):
        self.t_net = t_net
        self.s_net = s_net
        self.temperature = 1
        self.scale = 0.5

    def forward(self, x):
        t_feats, t_out, _ = self.t_net.extract_feature(x)
        s_feats, s_out, _ = self.s_net.extract_feature(x)
        feat_T = t_feats[5]
        feat_S = s_feats[5]
        loss_distill = distillation_loss(feat_S, feat_T, scale=self.scale)
        return s_out, loss_distill


# --------------------------- pure-JAX reference ------------------------------
def _ref_maxpool_ceil(f, ph, pw):
    """nn.MaxPool2d(kernel=(ph,pw), stride=(ph,pw), padding=0, ceil_mode=True):
    ragged edge windows are clipped to the input."""
    B, C, H, W = f.shape
    nh, nw = _ceil_div(H, ph), _ceil_div(W, pw)
    rows = []
    for i in range(nh):
        cols = []
        for j in range(nw):
            win = f[:, :, i * ph:min((i + 1) * ph, H), j * pw:min((j + 1) * pw, W)]
            cols.append(win.max(axis=(2, 3)))
        rows.append(jnp.stack(cols, axis=-1))
    return jnp.stack(rows, axis=-2)                          # (B, C, nh, nw)


def _ref_similarity(feat):
    feat = feat.astype(jnp.float32)
    norm = jnp.sqrt((feat ** 2).sum(axis=1, keepdims=True)) + 1e-8
    feat = feat / norm
    feat = feat.reshape(feat.shape[0], feat.shape[1], -1)
    return jnp.einsum('icm,icn->imn', feat, feat)


def _ref_sim_dis(feat_s, feat_t, scale=0.5):
    H, W = feat_t.shape[2], feat_t.shape[3]
    ph, pw = int(H * scale), int(W * scale)
    ps = _ref_maxpool_ceil(feat_s, ph, pw)
    pt = _ref_maxpool_ceil(feat_t, ph, pw)
    err = ((_ref_similarity(pt) - _ref_similarity(ps)) ** 2
           / (pt.shape[-1] * pt.shape[-2]) ** 2 / pt.shape[0])
    return err.sum()


if __name__ == "__main__":
    key = jax.random.PRNGKey(0)
    k_x, k_t, k_s, k_a, k_b = jax.random.split(key, 5)

    # --- Distiller forward at the module's implied small shapes -------------
    B, Cin, H, W = 2, 4, 16, 16
    x = jax.random.normal(k_x, (B, Cin, H, W), jnp.float32)

    t_net = TinyFeatureNet(k_t, Cin, [8, 8, 16, 16, 16, 8], num_classes=10)
    s_net = TinyFeatureNet(k_s, Cin, [4, 4, 8, 8, 8, 8], num_classes=10)
    distiller = Distiller(t_net, s_net)

    s_out, loss = distiller.forward(x)
    jax.block_until_ready((s_out, loss))

    t_feats, _, _ = t_net.extract_feature(x)
    s_feats, _, _ = s_net.extract_feature(x)
    ref = _ref_sim_dis(s_feats[5], t_feats[5], scale=0.5)
    np.testing.assert_allclose(np.asarray(loss), np.asarray(ref),
                               rtol=1e-4, atol=1e-6)

    # --- odd-spatial case: exercises ceil_mode ragged windows and the
    # --- non-divisible-batch zero-padding path (review correctness concern) --
    B2, C2s, C2t, H2, W2 = 3, 8, 16, 15, 13
    fs = jax.random.normal(k_a, (B2, C2s, H2, W2), jnp.float32)
    ft = jax.random.normal(k_b, (B2, C2t, H2, W2), jnp.float32)
    loss2 = distillation_loss(fs, ft, scale=0.5)
    jax.block_until_ready(loss2)
    ref2 = _ref_sim_dis(fs, ft, scale=0.5)
    np.testing.assert_allclose(np.asarray(loss2), np.asarray(ref2),
                               rtol=1e-4, atol=1e-6)

    print("KERNEL_OK")
</pallas_src>

<mosaic_0001>
module attributes {stable_mosaic.version = 11 : i64} {
  func.func @_sim_dis_kernel(%arg0: i32, %arg1: memref<1x4x8xf32, #tpu.memory_space<vmem>>, %arg2: memref<1x4x8xf32, #tpu.memory_space<vmem>>, %arg3: memref<8x128xf32, #tpu.memory_space<vmem>>) attributes {dimension_semantics = [#tpu.dimension_semantics<parallel>], iteration_bounds = array<i64: 2>, scalar_prefetch = 0 : i64, scratch_operands = 0 : i64, tpu.core_type = #tpu.core_type<tc>, window_params = [{transform_indices = @transform_0, window_bounds = array<i64: 1, 4, 8>}, {transform_indices = @transform_1, window_bounds = array<i64: 1, 4, 8>}, {transform_indices = @transform_2, window_bounds = array<i64: 8, 128>}]} {
    %c0 = arith.constant 0 : index
    %c0_0 = arith.constant 0 : index
    %c0_1 = arith.constant 0 : index
    %0 = vector.load %arg1[%c0, %c0_0, %c0_1] : memref<1x4x8xf32, #tpu.memory_space<vmem>>, vector<1x4x8xf32>
    %1 = arith.mulf %0, %0 : vector<1x4x8xf32>
    %cst = arith.constant dense<0.000000e+00> : vector<1x4xf32>
    %2 = vector.multi_reduction <add>, %1, %cst [2] : vector<1x4x8xf32> to vector<1x4xf32>
    %3 = vector.shape_cast %2 : vector<1x4xf32> to vector<1x4x1xf32>
    %cst_2 = arith.constant 1.000000e-16 : f32
    %4 = vector.broadcast %cst_2 : f32 to vector<1x4x1xf32>
    %5 = arith.addf %3, %4 : vector<1x4x1xf32>
    %6 = math.rsqrt %5 : vector<1x4x1xf32>
    %7 = vector.broadcast %6 : vector<1x4x1xf32> to vector<1x4x8xf32>
    %8 = arith.mulf %0, %7 : vector<1x4x8xf32>
    %c0_3 = arith.constant 0 : index
    %c0_4 = arith.constant 0 : index
    %c0_5 = arith.constant 0 : index
    %9 = vector.load %arg2[%c0_3, %c0_4, %c0_5] : memref<1x4x8xf32, #tpu.memory_space<vmem>>, vector<1x4x8xf32>
    %10 = arith.mulf %9, %9 : vector<1x4x8xf32>
    %cst_6 = arith.constant dense<0.000000e+00> : vector<1x4xf32>
    %11 = vector.multi_reduction <add>, %10, %cst_6 [2] : vector<1x4x8xf32> to vector<1x4xf32>
    %12 = vector.shape_cast %11 : vector<1x4xf32> to vector<1x4x1xf32>
    %cst_7 = arith.constant 1.000000e-16 : f32
    %13 = vector.broadcast %cst_7 : f32 to vector<1x4x1xf32>
    %14 = arith.addf %12, %13 : vector<1x4x1xf32>
    %15 = math.rsqrt %14 : vector<1x4x1xf32>
    %16 = vector.broadcast %15 : vector<1x4x1xf32> to vector<1x4x8xf32>
    %17 = arith.mulf %9, %16 : vector<1x4x8xf32>
    "tpu.trace_start"() <{level = 10 : i32, message = "bmc,bnc->bmn"}> : () -> ()
    %cst_8 = arith.constant dense<0.000000e+00> : vector<1x4x4xf32>
    %18 = tpu.matmul %8, %8, %cst_8 {dimension_numbers = #tpu.dot_dimension_numbers<[2], [2], [1], [1], [0, 0, 0, 1, 1, 1], [0], [0]>} : vector<1x4x8xf32>, vector<1x4x8xf32>, vector<1x4x4xf32> -> vector<1x4x4xf32>
    %cst_9 = arith.constant dense<0.000000e+00> : vector<1x4x4xf32>
    %19 = tpu.matmul %17, %17, %cst_9 {dimension_numbers = #tpu.dot_dimension_numbers<[2], [2], [1], [1], [0, 0, 0, 1, 1, 1], [0], [0]>} : vector<1x4x8xf32>, vector<1x4x8xf32>, vector<1x4x4xf32> -> vector<1x4x4xf32>
    "tpu.trace_stop"() : () -> ()
    %20 = arith.subf %19, %18 : vector<1x4x4xf32>
    %21 = arith.mulf %20, %20 : vector<1x4x4xf32>
    %cst_10 = arith.constant dense<0.000000e+00> : vector<1x4xf32>
    %22 = vector.multi_reduction <add>, %21, %cst_10 [2] : vector<1x4x4xf32> to vector<1x4xf32>
    %23 = vector.shape_cast %22 : vector<1x4xf32> to vector<1x4x1xf32>
    %cst_11 = arith.constant dense<0.000000e+00> : vector<1x1xf32>
    %24 = vector.multi_reduction <add>, %23, %cst_11 [1] : vector<1x4x1xf32> to vector<1x1xf32>
    %25 = vector.shape_cast %24 : vector<1x1xf32> to vector<1x1x1xf32>
    %cst_12 = arith.constant dense<0.000000e+00> : vector<1x1xf32>
    %26 = vector.multi_reduction <add>, %25, %cst_12 [0] : vector<1x1x1xf32> to vector<1x1xf32>
    %cst_13 = arith.constant 0.000000e+00 : f32
    %27 = vector.broadcast %cst_13 : f32 to vector<8x128xf32>
    %cst_14 = arith.constant 3.125000e-02 : f32
    %28 = vector.broadcast %cst_14 : f32 to vector<1x1xf32>
    %29 = arith.mulf %26, %28 : vector<1x1xf32>
    %30 = vector.broadcast %29 : vector<1x1xf32> to vector<8x128xf32>
    %31 = arith.addf %27, %30 : vector<8x128xf32>
    %c0_15 = arith.constant 0 : index
    %c0_16 = arith.constant 0 : index
    %32 = vector.load %arg3[%c0_15, %c0_16] : memref<8x128xf32, #tpu.memory_space<vmem>>, vector<8x128xf32>
    tpu.vector_store %arg3[%c0_15, %c0_16], %31 {strides = array<i32>} : memref<8x128xf32, #tpu.memory_space<vmem>>, vector<8x128xf32>,
    return
  }
  func.func @transform_0(%arg0: i32) -> (i32, i32, i32) {
    %c0_i32 = arith.constant 0 : i32
    %c0_i32_0 = arith.constant 0 : i32
    %c0_i32_1 = arith.constant 0 : i32
    return %arg0, %c0_i32, %c0_i32_0 : i32, i32, i32
  }
  func.func @transform_1(%arg0: i32) -> (i32, i32, i32) {
    %c0_i32 = arith.constant 0 : i32
    %c0_i32_0 = arith.constant 0 : i32
    %c0_i32_1 = arith.constant 0 : i32
    return %arg0, %c0_i32, %c0_i32_0 : i32, i32, i32
  }
  func.func @transform_2(%arg0: i32) -> (i32, i32) {
    %c0_i32 = arith.constant 0 : i32
    %c0_i32_0 = arith.constant 0 : i32
    return %arg0, %c0_i32 : i32, i32
  }
}

</mosaic_0001>

<bundles_post_ra>
// kernel: tpu_custom_call.1
= control target key start
LH: loop header
LB: loop body
LE: loop exit
PB: predicated region body
PF: predicated region fallthrough
CT: control target
= control target key end

     0   :  { %7 = vsyncpa [#allocation3], 0  ;;  %s937_s0 = inlined_call_operand.hbm [shape: f32[2,4,8], index: 0, kind: input, shape index: {}]   ;;  %s938_s1 = inlined_call_operand.hbm [shape: f32[2,4,8], index: 1, kind: input, shape index: {}]   ;;  %s939_s2 = inlined_call_operand.hbm [shape: f32[16,128], index: 2, kind: output, shape index: {}]  }
   0x1   :  { %9 = vsyncpa [#allocation3 + $0x1], 0 }
   0x2   :  { %10 = vsyncpa [#allocation6], 0 }
   0x3   :  { %12 = vsyncpa [#allocation6 + $0x1], 0 }
   0x4   :  { %13 = vsyncpa [#allocation4], 0 }
   0x5   :  { %15 = vsyncpa [#allocation4 + $0x1], 0  ;;  %s727_s9 = smov 0   ;;  %s729_s10 = smov 0  }
   0x6   :  { %s731_s11 = smov 0   ;;  %s733_s12 = smov 0  }
   0x7 LB: > { %s748_s13 = sadd.s32 4294967295, %s705_s12   ;;  %s485_s14 = sadd.s32 4294967294, %s705_s12   ;;  %s705_s12 = sphi %s733_s12, %s958_s12   ;;  %s701_s11 = sphi %s731_s11, %s957_s11   ;;  %s697_s10 = sphi %s729_s10, %s956_s10   ;;  %s693_s9 = sphi %s727_s9, %s955_s9  }
   0x8   : > { %s752_s15 = sadd.s32 1, %s705_s12   ;;  %s28_s16 = sadd.s32 1, %s701_s11 }
   0x9   : > { %s25_s17 = ssub.s32 %s705_s12, %s752_s15  ;;  %p35_p0 = scmp.ne.s32.totalorder %s701_s11, %s697_s10 }
   0xa   : > { %p26_p1 = scmp.eq.s32.totalorder %s25_s17, 0  ;;  %p36_p2 = scmp.eq.s32.totalorder %s705_s12, 0 }
   0xb   : > { %p41_p3 = scmp.ne.s32.totalorder %s697_s10, %s693_s9  ;;  %p42_p4 = scmp.eq.s32.totalorder %s748_s13, 0 }
   0xc   : > { %s764_s18 = scalar_select %p26_p1, %s701_s11, %s28_s16  }
   0xd   : > { %p766_p5 = por %p36_p2, %p35_p0  ;;  %p770_p6 = por %p42_p4, %p41_p3 }
   0xe   : > { %p91_p7 = scmp.eq.s32.totalorder %s748_s13, 1  ;;  %p97_p8 = scmp.eq.s32.totalorder %s485_s14, 1 }
   0xf   : > { %s943_s20 = scalar_select %p770_p6, 1, 0 }
  0x10   : > { %p535_p10 = scmp.lt.s32.totalorder %s705_s12, 2  ;;  %p777_p11 = por %p91_p7, %p35_p0 }
  0x11   : > { %p781_p12 = por %p97_p8, %p41_p3  ;;  %s786_s23 = sand.u32 1, %s701_s11  }
  0x12   : > { %s944_s21 = scalar_select %p777_p11, 1, 0 }
  0x13   : > { %s945_s22 = scalar_select %p781_p12, 1, 0 }
  0x14   : > { %s489_s24 = sshll.u32 %s705_s12, 6  ;;  %s488_s25 = sshll.u32 %s786_s23, 2 }
  0x15   : > { %s795_s28 = scalar_lea.hbm %s937_s0, %s489_s24  ;;  %s121_s29 = scalar_lea.vmem [#allocation2], %s488_s25 }
  0x16   : > { %s128_s30 = sshll.u32 %s121_s29, 4  ;;  %p801_p13 = pnand %p535_p10, %p766_p5  ;;  %s805_s30 = int_to_ptr.vmem [resolvable:$true] %s128_s30 }
  0x17   : > { %s118_s4 = scalar_lea.sflag [#allocation3], %s786_s23  ;;  %s575_s5 = scalar_lea.hbm %s795_s28, 64 }
  0x18   : > { %p576_p2 = scmp.ne.s32.totalorder %s795_s28, %s575_s5  ;;  %p577_p3 = pneg %p801_p13 }
  0x19   : > { %s580_s8 = scalar_lea.hbm %s937_s0, 128  ;;  %p581_p5 = scmp.lt.u32.totalorder %s795_s28, %s937_s0 }
  0x1a   : > { %p578_p4 = pnand %p577_p3, %p576_p2  ;;  %p582_p8 = scmp.lt.u32.totalorder %s580_s8, %s575_s5 }
  0x1b   : > { %p584_p9 = scmp.lt.u32.totalorder %s575_s5, %s795_s28 }
  0x1c   : > { %p579_p7 = pneg %p578_p4  ;;  %p583_p10 = por %p582_p8, %p581_p5 }
  0x1e   : > { %p585_p0 = por %p584_p9, %p583_p10 }
  0x20   : > { %p586_p1 = pnand %p585_p0, %p579_p7 }
  0x22   : > { %589 = shalt.err (!%p586_p1)
}
  0x23   : > { %s590_s17 = scalar_lea.vmem %s805_s30, 64  ;;  %s707_s19 = smov [#allocation2]  }
  0x24   : > { %p591_p2 = scmp.ne.s32.totalorder %s805_s30, %s590_s17  ;;  %s595_s26 = sshll.u32 %s707_s19, 4  ;;  %s596_s26 = int_to_ptr.vmem [resolvable:$false] %s595_s26 }
  0x25   : > { %s597_s27 = scalar_lea.vmem %s596_s26, 128  ;;  %p598_p11 = scmp.lt.s32.totalorder %s805_s30, %s596_s26 }
  0x26   : > { %p593_p4 = pnand %p591_p2, %p577_p3  ;;  %p599_p5 = scmp.lt.s32.totalorder %s597_s27, %s590_s17 }
  0x28   : > { %p594_p12 = pneg %p593_p4  ;;  %p600_p8 = por %p599_p5, %p598_p11 }
  0x2a   : > { %p601_p9 = pnand %p600_p8, %p594_p12 }
  0x2c   : > { %604 = shalt.err (!%p601_p9)
}
  0x2d   : > { %527 = dma.hbm_to_vmem [thread:$0]  (!%p801_p13), %s795_s28, 64, %s805_s30, %s118_s4  }
  0x2e   : > { %p947_p0 = scmp.lt.s32.totalorder %s705_s12, 3  ;;  %p948_p1 = scmp.ge.s32.totalorder %s705_s12, 1 }
  0x2f   : > { %s848_s7 = scalar_lea.hbm %s938_s1, %s489_s24  ;;  %s139_s8 = scalar_lea.vmem [#allocation5], %s488_s25 }
  0x30   : > { %p839_p7 = pnand %p948_p1, %p947_p0  ;;  %s146_s14 = sshll.u32 %s139_s8, 4  ;;  %s147_s14 = int_to_ptr.vmem [resolvable:$true] %s146_s14 }
  0x31   : > { %s136_s28 = scalar_lea.sflag [#allocation6], %s786_s23  ;;  %s605_s30 = scalar_lea.hbm %s848_s7, 64 }
  0x32   : > { %s949_s29 = scalar_select %p839_p7, 1, 0 }
  0x33   : > { %p606_p11 = scmp.ne.s32.totalorder %s848_s7, %s605_s30  ;;  %s610_s24 = scalar_lea.hbm %s938_s1, 128 }
  0x34   : > { %p611_p2 = scmp.lt.u32.totalorder %s848_s7, %s938_s1  ;;  %p612_p4 = scmp.lt.u32.totalorder %s610_s24, %s605_s30 }
  0x35   : > { %p608_p12 = pnand %p606_p11, %p577_p3  ;;  %p614_p8 = scmp.lt.u32.totalorder %s605_s30, %s848_s7 }
  0x36   : > { %p613_p5 = por %p612_p4, %p611_p2 }
  0x37   : > { %p609_p10 = pneg %p608_p12 }
  0x38   : > { %p615_p9 = por %p614_p8, %p613_p5 }
  0x3a   : > { %p616_p0 = pnand %p615_p9, %p609_p10 }
  0x3c   : > { %619 = shalt.err (!%p616_p0)
}
  0x3d   : > { %s620_s23 = scalar_lea.vmem %s147_s14, 64  ;;  %s708_s25 = smov [#allocation5]  }
  0x3e   : > { %p621_p1 = scmp.ne.s32.totalorder %s147_s14, %s620_s23  ;;  %s625_s26 = sshll.u32 %s708_s25, 4  ;;  %s626_s26 = int_to_ptr.vmem [resolvable:$false] %s625_s26 }
  0x3f   : > { %s627_s27 = scalar_lea.vmem %s626_s26, 128  ;;  %p628_p6 = scmp.lt.s32.totalorder %s147_s14, %s626_s26 }
  0x40   : > { %p623_p11 = pnand %p621_p1, %p577_p3  ;;  %p629_p7 = scmp.lt.s32.totalorder %s627_s27, %s620_s23 }
  0x42   : > { %p624_p12 = pneg %p623_p11  ;;  %p630_p2 = por %p629_p7, %p628_p6 }
  0x44   : > { %p631_p4 = pnand %p630_p2, %p624_p12 }
  0x46   : > { %634 = shalt.err (!%p631_p4)
}
  0x47   : > { %530 = dma.hbm_to_vmem [thread:$0]  (!%p801_p13), %s848_s7, 64, %s147_s14, %s136_s28  }
  0x48   : > { %p950_p10 = scmp.ne.s32.totalorder %s949_s29, 0 }
  0x49   : > { %s875_s5 = sand.u32 (!%p950_p10), 1, %s697_s10   ;;  %p951_p3 = scmp.ne.s32.totalorder (!%p950_p10), %s943_s20, 0 }
  0x4a   : > { %155 = sbr.rel (%p950_p10) target bundleno = 640 (0x280), region = 28  ;;  %s493_s6 = sshll.u32 (!%p950_p10), %s875_s5, 2 }
  0x4b   : > { %s158_s8 = scalar_lea.sflag (!%p950_p10), [#allocation3], %s875_s5  ;;  %s161_s30 = scalar_lea.vmem (!%p950_p10), [#allocation2], %s493_s6 }
  0x51   : > { %680 = dma.done.wait (%p951_p3), %s158_s8, 64  }
  0x52   : > { %682 = vsyncadd (%p951_p3), %s158_s8, 4294967232  ;;  %s167_s3 = scalar_lea.sflag [#allocation6], %s875_s5  ;;  %s170_s7 = scalar_lea.vmem [#allocation5], %s493_s6 }
  0x53   : > { %684 = dma.done.wait (%p951_p3), %s167_s3, 64  }
  0x54   : > { %686 = vsyncadd (%p951_p3), %s167_s3, 4294967232  ;;  %v196_v0 = vld [vmem:[%s161_s30] sm:$0xf]  ;;  %vm198_vm0 = vcmask 60416   ;;  %v205_v1 = vld [vmem:[%s170_s7] sm:$0xf] }
  0x55   : > { %v197_v2 = vmul.f32 %v196_v0, %v196_v0  ;;  %v206_v3 = vmul.f32 %v205_v1, %v205_v1  ;;  %v709_v6 = vmov 0.0   ;;  %vm710_vm1 = vmmov 0   ;;  %s495_s20 = sshll.u32 %s875_s5, 3  ;;  %s501_s29 = sshll.u32 %s748_s13, 7 }
  0x56   : > { %508 = vmatprep.subr.mxu0 %v709_v6  ;;  %513 = vmatprep.subr.mxu1 %v709_v6  ;;  %vm213_vm2 = vcmask 64512   ;;  %vm362_vm3 = vcmask 27648   ;;  %vm366_vm4 = vcmask 1043456   ;;  %s195_s14 = scalar_lea.vmem [#allocation7], %s495_s20  ;;  %s893_s24 = scalar_lea.hbm %s939_s2, %s501_s29 }
  0x57   : > { %v199_v4 = vsel %vm198_vm0, %v197_v2, 0.0  ;;  %v207_v5 = vsel %vm198_vm0, %v206_v3, 0.0  ;;  %510 = vmatprep.mubr.msk.f32.mxu0 %vm710_vm1, %v709_v6  ;;  %515 = vmatprep.mubr.msk.f32.mxu1 %vm710_vm1, %v709_v6  ;;  %s392_s28 = sshll.u32 %s195_s14, 4  ;;  %s379_s17 = scalar_lea.sflag [#allocation4], %s875_s5  ;;  %s895_s28 = int_to_ptr.vmem [resolvable:$true] %s392_s28 }
  0x58   : > { %200 = vadd.xlane.f32.xlu0 %v199_v4  ;;  %s635_s19 = scalar_lea.vmem %s895_s28, 128  ;;  %p952_p13 = scmp.ne.s32.totalorder %s944_s21, 0 }
  0x59   : > { %p636_p6 = scmp.ne.s32.totalorder %s895_s28, %s635_s19  ;;  %s711_s13 = smov [#allocation7]  }
  0x5a   : > { %s639_s23 = sshll.u32 %s711_s13, 4  ;;  %s640_s23 = int_to_ptr.vmem [resolvable:$false] %s639_s23 }
  0x5b   : > { %p637_p7 = pnand %p636_p6, %p952_p13  ;;  %s641_s25 = scalar_lea.vmem %s640_s23, 256 }
  0x5c   : > { %208 = vadd.xlane.f32.xlu0 %v207_v5  ;;  %p642_p8 = scmp.lt.s32.totalorder %s895_s28, %s640_s23  ;;  %p643_p9 = scmp.lt.s32.totalorder %s641_s25, %s635_s19 }
  0x5d   : > { %p638_p5 = pneg %p637_p7 }
  0x5e   : > { %p644_p0 = por %p643_p9, %p642_p8 }
  0x60   : > { %p645_p1 = pnand %p644_p0, %p638_p5 }
  0xe5   : > { %v201_v7 = vpop.xlane.xlu0 %200 }
  0xe6   : > { %v202_v8 = vadd.f32 1e-16, %v201_v7 }
  0xe8   : > { %571 = vrsqrt.f32 %v202_v8 }
  0xe9   : > { %v209_v9 = vpop.xlane.xlu0 %208 }
  0xea   : > { %v210_v10 = vadd.f32 1e-16, %v209_v9 }
  0xec   : > { %573 = vrsqrt.f32 %v210_v10 }
  0xf2   : > { %v572_v11 = vpop.eup %571 }
  0xf3   : > { %v204_v12 = vmul.f32 %v572_v11, %v196_v0 }
  0xf5   : > { %509 = vmatpush3.xpose.msk.msra.mxu0 %vm213_vm2, %v204_v12 }
  0xf6   : > { %v574_v13 = vpop.eup %573 }
  0xf7   : > { %v212_v14 = vmul.f32 %v574_v13, %v205_v1 }
  0xf8   : > { %511 = vmatmul.mubr.msk.f32.vlgmr.msra.gmra.mrb[0].mxu0 %vm213_vm2, %v204_v12 }
  0xf9   : > { %514 = vmatpush3.xpose.msk.msra.mxu1 %vm213_vm2, %v212_v14 }
  0xfc   : > { %516 = vmatmul.mubr.msk.f32.vlgmr.msra.gmra.mrb[0].mxu1 %vm213_vm2, %v212_v14 }
 0x1cb   : > { %v283_v15 = vpop.f32.mrb[0].mxu0 }
 0x1cc   : > { %v512_v16 = vpop.f32.mrb[1].mxu0 }
 0x1cf   : > { %v356_v17 = vpop.f32.mrb[0].mxu1 }
 0x1d0   : > { %v360_v18 = vsub.f32 %v356_v17, %v283_v15  ;;  %v517_v19 = vpop.f32.mrb[1].mxu1 }
 0x1d2   : > { %v361_v20 = vmul.f32 %v360_v18, %v360_v18 }
 0x1d4   : > { %v363_v21 = vsel %vm362_vm3, %v361_v20, 0.0 }
 0x1d5   : > { %364 = vadd.xlane.f32.xlu1 %v363_v21 }
 0x262   : > { %v365_v22 = vpop.xlane.xlu1 %364 }
 0x263   : > { %v367_v23 = vsel %vm366_vm4, %v365_v22, 0.0 }
 0x264   : > { %v368_v24 = vrot.slane %v367_v23, 4 }
 0x266   : > { %v369_v25 = vadd.f32 %v368_v24, %v367_v23 }
 0x268   : > { %v370_v26 = vrot.slane %v369_v25, 2 }
 0x26a   : > { %v371_v27 = vadd.f32 %v370_v26, %v369_v25 }
 0x26c   : > { %v372_v28 = vrot.slane %v371_v27, 1 }
 0x26e   : > { %v373_v29 = vadd.f32 %v372_v28, %v371_v27 }
 0x270   : > { %v375_v30 = vmul.f32 0.03125, %v373_v29 }
 0x272   : > { %377 = vst [vmem:[%s195_s14] sm:$0xff] %v375_v30 }
 0x273   : > { %648 = shalt.err (!%p645_p1)
}
 0x274   : > { %s649_s26 = scalar_lea.hbm %s893_s24, 128  ;;  %s653_s6 = scalar_lea.hbm %s939_s2, 256 }
 0x275   : > { %p650_p11 = scmp.ne.s32.totalorder %s893_s24, %s649_s26  ;;  %p654_p4 = scmp.lt.u32.totalorder %s893_s24, %s939_s2 }
 0x276   : > { %p655_p10 = scmp.lt.u32.totalorder %s653_s6, %s649_s26  ;;  %p657_p6 = scmp.lt.u32.totalorder %s649_s26, %s893_s24 }
 0x277   : > { %p651_p12 = pnand %p650_p11, %p952_p13 }
 0x278   : > { %p656_p3 = por %p655_p10, %p654_p4 }
 0x279   : > { %p652_p2 = pneg %p651_p12 }
 0x27a   : > { %p658_p7 = por %p657_p6, %p656_p3 }
 0x27c   : > { %p659_p5 = pnand %p658_p7, %p652_p2 }
 0x27e   : > { %662 = shalt.err (!%p659_p5)
}
 0x27f   : > { %522 = dma.vmem_to_hbm [thread:$0]  (%p952_p13), %s895_s28, 128, %s893_s24, %s379_s17  }
 0x280 PF: > { %s404_s3 = sand.u32 1, %s693_s9   ;;  %p953_p8 = scmp.ne.s32.totalorder %s945_s22, 0 }
 0x281   : > { %p954_p9 = scmp.ge.s32.totalorder %s705_s12, 2  ;;  %s405_s7 = scalar_lea.sflag [#allocation4], %s404_s3 }
 0x283   : > { %p532_p0 = pnand %p954_p9, %p953_p8 }
 0x285   : > { %688 = dma.done.wait (!%p532_p0), %s405_s7, 128  }
 0x286   : > { %690 = vsyncadd (!%p532_p0), %s405_s7, 4294967168  ;;  %p18_p1 = scmp.ge.s32.totalorder %s752_s15, 4   ;;  %s955_s9 = smov %s697_s10 }
 0x287   : > { %s956_s10 = smov %s701_s11  ;;  %s957_s11 = smov %s764_s18 }
 0x288   : > { %s958_s12 = smov %s752_s15  ;;  %20 = sbr.rel (!%p18_p1) target bundleno = 7 (0x7), region = 86 }
 0x28f   :  { %410 = vsyncpa [#allocation3], 1 }
 0x290   :  { %412 = vsyncpa [#allocation3 + $0x1], 1 }
 0x291   :  { %413 = vsyncpa [#allocation6], 1 }
 0x292   :  { %415 = vsyncpa [#allocation6 + $0x1], 1 }
 0x293   :  { %416 = vsyncpa [#allocation4], 1 }
 0x294   :  { %418 = vsyncpa [#allocation4 + $0x1], 1 }

</bundles_post_ra>
